<compile_context>
chip_gen: v5e
topology: v5e:2x2
jax: 0.10.0
libtpu: 0.0.40
codegen_flags: <defaults>
</compile_context>

<pallas_src>
import functools

import jax
import jax.numpy as jnp
from jax.experimental import pallas as pl
from jax.experimental.pallas import tpu as pltpu


# ----------------------------- config ---------------------------------------
CONFIG = {
    "model": {
        "n_input": 2,
        "n_output": 1,
        "n_nodes": 32,
        "n_layers": 3,      # -> 1 input layer + (n_layers - 1) hidden layers + output layer
        "lr": 1e-3,
        "param_1": 1.0,
        "param_2": 1.0,
        "param_3": 1.0,
        "lambda1": 1.0,
        "lambda2": 1.0,
    }
}
BATCH = 512      # collocation points per call
TILE_B = 256     # batch (lane-axis) columns per grid step -> grid=(2,):
                 # low fixed pipeline overhead, and on v7x each TensorCore
                 # takes one "parallel" step.


# ----------------------------- kernel ---------------------------------------
def _pinn_kernel(xT_ref, w0T_ref, b0T_ref, whT_ref, bhT_ref, weT_ref, beT_ref,
                 oT_ref, *, n_hidden, n_input):
    """Feature-major fused MLP: activations are (features, batch) so the batch
    dimension sits on the 128-wide lane axis (lane-dense tanh / VPU / stores)."""
    xT = xT_ref[...]                                   # (n_input, TB)

    # fcs: Linear(N_input, N_nodes) + Tanh.  K = n_input (=2) is degenerate for
    # the systolic array -> do it on the VPU as n_input broadcast multiply-adds.
    acc = b0T_ref[...]                                 # (n_nodes, 1) broadcasts over lanes
    for k in range(n_input):                           # static, fully unrolled
        acc = acc + w0T_ref[:, k:k + 1] * xT[k:k + 1, :]
    h = jnp.tanh(acc)                                  # (n_nodes, TB), lane-dense

    # fch: (N_layers - 1) x [Linear(N_nodes, N_nodes) + Tanh] on the MXU,
    # batch stays on the lane axis throughout.
    for i in range(n_hidden):                          # static trip count
        h = jnp.tanh(
            jnp.dot(whT_ref[i], h, preferred_element_type=jnp.float32)
            + bhT_ref[i]
        )

    # fce: Linear(N_nodes, N_output).  Result (n_output, TB) is already
    # lane-dense along the batch -> full `vst` stores, no padding needed.
    oT_ref[...] = (
        jnp.dot(weT_ref[...], h, preferred_element_type=jnp.float32)
        + beT_ref[...]
    ).astype(oT_ref.dtype)


# --------------------------- param handling ----------------------------------
def init_params(key, n_input, n_nodes, n_output, n_layers):
    """PyTorch-style Linear init: U(-1/sqrt(fan_in), 1/sqrt(fan_in)).
    Weights stored math-layout (in_features, out_features): y = x @ W + b."""
    n_hidden = n_layers - 1
    ks = jax.random.split(key, 6)

    def u(k, shape, fan_in):
        bound = 1.0 / jnp.sqrt(jnp.float32(fan_in))
        return jax.random.uniform(k, shape, jnp.float32, -bound, bound)

    w0 = u(ks[0], (n_input, n_nodes), n_input)             # fcs weight
    b0 = u(ks[1], (1, n_nodes), n_input)                   # fcs bias
    wh = u(ks[2], (n_hidden, n_nodes, n_nodes), n_nodes)   # stacked hidden weights
    bh = u(ks[3], (n_hidden, 1, n_nodes), n_nodes)         # stacked hidden biases
    we = u(ks[4], (n_nodes, n_output), n_nodes)            # fce weight
    be = u(ks[5], (1, n_output), n_nodes)                  # fce bias
    return (w0, b0, wh, bh, we, be)


def prepare_kernel_params(params):
    """One-time, hoisted layout prep: feature-major (transposed) weights so the
    kernel computes h = tanh(W^T h + b^T).  Call once, reuse every forward."""
    w0, b0, wh, bh, we, be = params
    return (
        jnp.transpose(w0),                 # (n_nodes, n_input)
        jnp.transpose(b0),                 # (n_nodes, 1)
        jnp.transpose(wh, (0, 2, 1)),      # (n_hidden, n_nodes, n_nodes)
        jnp.transpose(bh, (0, 2, 1)),      # (n_hidden, n_nodes, 1)
        jnp.transpose(we),                 # (n_output, n_nodes)
        jnp.transpose(be),                 # (n_output, 1)
    )


# ------------------------------ wrapper --------------------------------------
def pinn_forward(x, kparams, *, n_hidden, tile_b=TILE_B):
    """x: (B, N_input) f32 -> (B, N_output) f32 (PyTorch PINN.forward)."""
    w0T, b0T, whT, bhT, weT, beT = kparams
    B, n_input = x.shape
    n_nodes = w0T.shape[0]
    n_output = weT.shape[0]

    # Batch lives on the lane axis; pad it up to a multiple of the tile.
    b_pad = ((B + tile_b - 1) // tile_b) * tile_b
    xT = jnp.transpose(x)                               # (n_input, B), lane-dense DMA
    if b_pad != B:
        xT = jnp.pad(xT, ((0, 0), (0, b_pad - B)))

    grid = (b_pad // tile_b,)
    kernel = functools.partial(_pinn_kernel, n_hidden=n_hidden, n_input=n_input)

    flops = 2 * b_pad * (n_input * n_nodes
                         + n_hidden * n_nodes * n_nodes
                         + n_nodes * n_output)
    transcendentals = b_pad * n_nodes * (1 + n_hidden)
    bytes_accessed = 4 * (xT.size + w0T.size + b0T.size + whT.size + bhT.size
                          + weT.size + beT.size + n_output * b_pad)

    outT = pl.pallas_call(
        kernel,
        out_shape=jax.ShapeDtypeStruct((n_output, b_pad), jnp.float32),
        grid=grid,
        in_specs=[
            # batch-tiled (lane axis) input
            pl.BlockSpec((n_input, tile_b), lambda i: (0, i)),
            # weights/biases: constant index_map -> DMA'd once, VMEM-resident
            pl.BlockSpec((n_nodes, n_input), lambda i: (0, 0)),
            pl.BlockSpec((n_nodes, 1), lambda i: (0, 0)),
            pl.BlockSpec((n_hidden, n_nodes, n_nodes), lambda i: (0, 0, 0)),
            pl.BlockSpec((n_hidden, n_nodes, 1), lambda i: (0, 0, 0)),
            pl.BlockSpec((n_output, n_nodes), lambda i: (0, 0)),
            pl.BlockSpec((n_output, 1), lambda i: (0, 0)),
        ],
        out_specs=pl.BlockSpec((n_output, tile_b), lambda i: (0, i)),
        compiler_params=pltpu.CompilerParams(
            dimension_semantics=("parallel",),     # 2 steps -> both v7x TCs busy
            vmem_limit_bytes=4 * 1024 * 1024,      # honest bound; footprint << 1 MiB
        ),
        cost_estimate=pl.CostEstimate(
            flops=flops,
            transcendentals=transcendentals,
            bytes_accessed=bytes_accessed,
        ),
    )(xT, w0T, b0T, whT, bhT, weT, beT)

    # (n_output, B) -> (B, n_output); tiny transpose of the real (unpadded) data.
    return jnp.transpose(outT[:, :B])


def reference_forward(x, params, *, n_hidden):
    w0, b0, wh, bh, we, be = params
    h = jnp.tanh(x @ w0 + b0)
    for i in range(n_hidden):
        h = jnp.tanh(h @ wh[i] + bh[i])
    return h @ we + be


# ------------------------------ main -----------------------------------------
if __name__ == "__main__":
    m = CONFIG["model"]
    n_input, n_output = m["n_input"], m["n_output"]
    n_nodes, n_layers = m["n_nodes"], m["n_layers"]
    n_hidden = n_layers - 1

    key = jax.random.PRNGKey(0)
    k_params, k_x = jax.random.split(key)

    params = init_params(k_params, n_input, n_nodes, n_output, n_layers)
    kparams = prepare_kernel_params(params)       # hoisted one-time layout prep

    x = jax.random.normal(k_x, (BATCH, n_input), jnp.float32)

    fwd = jax.jit(functools.partial(pinn_forward, n_hidden=n_hidden))
    out = jax.block_until_ready(fwd(x, kparams))

    ref = reference_forward(x, params, n_hidden=n_hidden)
    assert out.shape == (BATCH, n_output)
    assert jnp.allclose(out, ref, atol=1e-4, rtol=1e-4), "mismatch vs reference"

    # TODO(synk): optional bf16 hidden-layer matmuls/tanh on v6e/v7x (not v5e)
    # and precision=HIGHEST for PINN training gradients, gated behind a
    # derivative-accuracy check; kept f32/default here since n_nodes=32 is tiny.
    print("KERNEL_OK")
</pallas_src>

<mosaic_0001>
module attributes {stable_mosaic.version = 11 : i64} {
  func.func @_pinn_kernel(%arg0: i32, %arg1: memref<2x256xf32, #tpu.memory_space<vmem>>, %arg2: memref<32x2xf32, #tpu.memory_space<vmem>>, %arg3: memref<32x1xf32, #tpu.memory_space<vmem>>, %arg4: memref<2x32x32xf32, #tpu.memory_space<vmem>>, %arg5: memref<2x32x1xf32, #tpu.memory_space<vmem>>, %arg6: memref<1x32xf32, #tpu.memory_space<vmem>>, %arg7: memref<1x1xf32, #tpu.memory_space<vmem>>, %arg8: memref<1x256xf32, #tpu.memory_space<vmem>>) attributes {dimension_semantics = [#tpu.dimension_semantics<parallel>], iteration_bounds = array<i64: 2>, scalar_prefetch = 0 : i64, scratch_operands = 0 : i64, tpu.core_type = #tpu.core_type<tc>, window_params = [{transform_indices = @transform_0, window_bounds = array<i64: 2, 256>}, {pipeline_mode = #tpu.pipeline_mode<synchronous>, transform_indices = @transform_1, window_bounds = array<i64: 32, 2>}, {pipeline_mode = #tpu.pipeline_mode<synchronous>, transform_indices = @transform_2, window_bounds = array<i64: 32, 1>}, {pipeline_mode = #tpu.pipeline_mode<synchronous>, transform_indices = @transform_3, window_bounds = array<i64: 2, 32, 32>}, {pipeline_mode = #tpu.pipeline_mode<synchronous>, transform_indices = @transform_4, window_bounds = array<i64: 2, 32, 1>}, {pipeline_mode = #tpu.pipeline_mode<synchronous>, transform_indices = @transform_5, window_bounds = array<i64: 1, 32>}, {pipeline_mode = #tpu.pipeline_mode<synchronous>, transform_indices = @transform_6, window_bounds = array<i64: 1, 1>}, {transform_indices = @transform_7, window_bounds = array<i64: 1, 256>}]} {
    %c0 = arith.constant 0 : index
    %c0_0 = arith.constant 0 : index
    %0 = vector.load %arg1[%c0, %c0_0] : memref<2x256xf32, #tpu.memory_space<vmem>>, vector<2x256xf32>
    %c0_1 = arith.constant 0 : index
    %c0_2 = arith.constant 0 : index
    %1 = vector.load %arg3[%c0_1, %c0_2] : memref<32x1xf32, #tpu.memory_space<vmem>>, vector<32x1xf32>
    %c0_3 = arith.constant 0 : index
    %c0_4 = arith.constant 0 : index
    %2 = vector.load %arg2[%c0_3, %c0_4] : memref<32x2xf32, #tpu.memory_space<vmem>>, vector<32x1xf32>
    %3 = vector.extract_strided_slice %0 {offsets = [0, 0], sizes = [1, 256], strides = [1, 1]} : vector<2x256xf32> to vector<1x256xf32>
    %4 = vector.broadcast %2 : vector<32x1xf32> to vector<32x256xf32>
    %5 = vector.broadcast %3 : vector<1x256xf32> to vector<32x256xf32>
    %6 = arith.mulf %4, %5 : vector<32x256xf32>
    %7 = vector.broadcast %1 : vector<32x1xf32> to vector<32x256xf32>
    %8 = arith.addf %7, %6 : vector<32x256xf32>
    %c0_5 = arith.constant 0 : index
    %c1 = arith.constant 1 : index
    %9 = vector.load %arg2[%c0_5, %c1] : memref<32x2xf32, #tpu.memory_space<vmem>>, vector<32x1xf32>
    %10 = vector.extract_strided_slice %0 {offsets = [1, 0], sizes = [1, 256], strides = [1, 1]} : vector<2x256xf32> to vector<1x256xf32>
    %11 = vector.broadcast %9 : vector<32x1xf32> to vector<32x256xf32>
    %12 = vector.broadcast %10 : vector<1x256xf32> to vector<32x256xf32>
    %13 = arith.mulf %11, %12 : vector<32x256xf32>
    %14 = arith.addf %8, %13 : vector<32x256xf32>
    %15 = math.tanh %14 : vector<32x256xf32>
    %c0_6 = arith.constant 0 : index
    %c0_7 = arith.constant 0 : index
    %c0_8 = arith.constant 0 : index
    %16 = vector.load %arg4[%c0_6, %c0_7, %c0_8] : memref<2x32x32xf32, #tpu.memory_space<vmem>>, vector<1x32x32xf32>
    %17 = vector.shape_cast %16 : vector<1x32x32xf32> to vector<32x32xf32>
    %cst = arith.constant dense<0.000000e+00> : vector<32x256xf32>
    %18 = tpu.matmul %17, %15, %cst {dimension_numbers = #tpu.dot_dimension_numbers<[1], [0], [0], [1], [0, 0, 1, 1], [], []>} : vector<32x32xf32>, vector<32x256xf32>, vector<32x256xf32> -> vector<32x256xf32>
    %c0_9 = arith.constant 0 : index
    %c0_10 = arith.constant 0 : index
    %c0_11 = arith.constant 0 : index
    %19 = vector.load %arg5[%c0_9, %c0_10, %c0_11] : memref<2x32x1xf32, #tpu.memory_space<vmem>>, vector<1x32x1xf32>
    %20 = vector.shape_cast %19 : vector<1x32x1xf32> to vector<32x1xf32>
    %21 = vector.broadcast %20 : vector<32x1xf32> to vector<32x256xf32>
    %22 = arith.addf %18, %21 : vector<32x256xf32>
    %23 = math.tanh %22 : vector<32x256xf32>
    %c1_12 = arith.constant 1 : index
    %c0_13 = arith.constant 0 : index
    %c0_14 = arith.constant 0 : index
    %24 = vector.load %arg4[%c1_12, %c0_13, %c0_14] : memref<2x32x32xf32, #tpu.memory_space<vmem>>, vector<1x32x32xf32>
    %25 = vector.shape_cast %24 : vector<1x32x32xf32> to vector<32x32xf32>
    %cst_15 = arith.constant dense<0.000000e+00> : vector<32x256xf32>
    %26 = tpu.matmul %25, %23, %cst_15 {dimension_numbers = #tpu.dot_dimension_numbers<[1], [0], [0], [1], [0, 0, 1, 1], [], []>} : vector<32x32xf32>, vector<32x256xf32>, vector<32x256xf32> -> vector<32x256xf32>
    %c1_16 = arith.constant 1 : index
    %c0_17 = arith.constant 0 : index
    %c0_18 = arith.constant 0 : index
    %27 = vector.load %arg5[%c1_16, %c0_17, %c0_18] : memref<2x32x1xf32, #tpu.memory_space<vmem>>, vector<1x32x1xf32>
    %28 = vector.shape_cast %27 : vector<1x32x1xf32> to vector<32x1xf32>
    %29 = vector.broadcast %28 : vector<32x1xf32> to vector<32x256xf32>
    %30 = arith.addf %26, %29 : vector<32x256xf32>
    %31 = math.tanh %30 : vector<32x256xf32>
    %c0_19 = arith.constant 0 : index
    %c0_20 = arith.constant 0 : index
    %32 = vector.load %arg6[%c0_19, %c0_20] : memref<1x32xf32, #tpu.memory_space<vmem>>, vector<1x32xf32>
    %cst_21 = arith.constant dense<0.000000e+00> : vector<1x256xf32>
    %33 = tpu.matmul %32, %31, %cst_21 {dimension_numbers = #tpu.dot_dimension_numbers<[1], [0], [0], [1], [0, 0, 1, 1], [], []>} : vector<1x32xf32>, vector<32x256xf32>, vector<1x256xf32> -> vector<1x256xf32>
    %c0_22 = arith.constant 0 : index
    %c0_23 = arith.constant 0 : index
    %34 = vector.load %arg7[%c0_22, %c0_23] : memref<1x1xf32, #tpu.memory_space<vmem>>, vector<1x1xf32>
    %35 = vector.broadcast %34 : vector<1x1xf32> to vector<1x256xf32>
    %36 = arith.addf %33, %35 : vector<1x256xf32>
    %c0_24 = arith.constant 0 : index
    %c0_25 = arith.constant 0 : index
    %37 = vector.load %arg8[%c0_24, %c0_25] : memref<1x256xf32, #tpu.memory_space<vmem>>, vector<1x256xf32>
    tpu.vector_store %arg8[%c0_24, %c0_25], %36 {strides = array<i32>} : memref<1x256xf32, #tpu.memory_space<vmem>>, vector<1x256xf32>,
    return
  }
  func.func @transform_0(%arg0: i32) -> (i32, i32) {
    %c0_i32 = arith.constant 0 : i32
    %c0_i32_0 = arith.constant 0 : i32
    return %c0_i32, %arg0 : i32, i32
  }
  func.func @transform_1(%arg0: i32) -> (i32, i32) {
    %c0_i32 = arith.constant 0 : i32
    %c0_i32_0 = arith.constant 0 : i32
    %c0_i32_1 = arith.constant 0 : i32
    return %c0_i32, %c0_i32_0 : i32, i32
  }
  func.func @transform_2(%arg0: i32) -> (i32, i32) {
    %c0_i32 = arith.constant 0 : i32
    %c0_i32_0 = arith.constant 0 : i32
    %c0_i32_1 = arith.constant 0 : i32
    return %c0_i32, %c0_i32_0 : i32, i32
  }
  func.func @transform_3(%arg0: i32) -> (i32, i32, i32) {
    %c0_i32 = arith.constant 0 : i32
    %c0_i32_0 = arith.constant 0 : i32
    %c0_i32_1 = arith.constant 0 : i32
    %c0_i32_2 = arith.constant 0 : i32
    return %c0_i32, %c0_i32_0, %c0_i32_1 : i32, i32, i32
  }
  func.func @transform_4(%arg0: i32) -> (i32, i32, i32) {
    %c0_i32 = arith.constant 0 : i32
    %c0_i32_0 = arith.constant 0 : i32
    %c0_i32_1 = arith.constant 0 : i32
    %c0_i32_2 = arith.constant 0 : i32
    return %c0_i32, %c0_i32_0, %c0_i32_1 : i32, i32, i32
  }
  func.func @transform_5(%arg0: i32) -> (i32, i32) {
    %c0_i32 = arith.constant 0 : i32
    %c0_i32_0 = arith.constant 0 : i32
    %c0_i32_1 = arith.constant 0 : i32
    return %c0_i32, %c0_i32_0 : i32, i32
  }
  func.func @transform_6(%arg0: i32) -> (i32, i32) {
    %c0_i32 = arith.constant 0 : i32
    %c0_i32_0 = arith.constant 0 : i32
    %c0_i32_1 = arith.constant 0 : i32
    return %c0_i32, %c0_i32_0 : i32, i32
  }
  func.func @transform_7(%arg0: i32) -> (i32, i32) {
    %c0_i32 = arith.constant 0 : i32
    %c0_i32_0 = arith.constant 0 : i32
    return %c0_i32, %arg0 : i32, i32
  }
}

</mosaic_0001>

<bundles_post_ra>
// kernel: pinn_forward.1
= control target key start
LH: loop header
LB: loop body
LE: loop exit
PB: predicated region body
PF: predicated region fallthrough
CT: control target
= control target key end

     0   :  { %s1177_s0 = inlined_call_operand.vmem [shape: f32[2,512], index: 0, kind: input, shape index: {}]   ;;  %s1178_s1 = inlined_call_operand.vmem [shape: f32[32,2], index: 1, kind: input, shape index: {}]   ;;  %s1179_s2 = inlined_call_operand.vmem [shape: f32[32,1], index: 2, kind: input, shape index: {}]   ;;  %s1180_s3 = inlined_call_operand.vmem [shape: f32[2,32,32], index: 3, kind: input, shape index: {}]   ;;  %s1181_s4 = inlined_call_operand.vmem [shape: f32[2,32,1], index: 4, kind: input, shape index: {}]   ;;  %s1182_s5 = inlined_call_operand.vmem [shape: f32[1,32], index: 5, kind: input, shape index: {}]   ;;  %s1183_s6 = inlined_call_operand.<no memory space> [shape: f32[1,1], index: 6, kind: input, shape index: {}]   ;;  %s1184_s7 = inlined_call_operand.hbm [shape: f32[1,512], index: 7, kind: output, shape index: {}]  }
   0x1   :  { %v12_v0 = vstv %s1183_s6 }
   0x2   :  { %13 = vst [vmem:[#allocation2] sm:$0x1] %v12_v0 }
   0x3   :  { %14 = vsyncpa [#allocation4], 0 }
   0x4   :  { %16 = vsyncpa [#allocation4 + $0x1], 0  ;;  %s996_s26 = smov 0   ;;  %s998_s27 = smov 0  }
   0x5   :  { %s1000_s28 = smov 0   ;;  %s1002_s29 = smov 0  }
   0x6 LB: > { %s751_s6 = sadd.s32 4294967295, %s949_s29   ;;  %s752_s30 = sadd.s32 4294967294, %s949_s29   ;;  %s949_s29 = sphi %s1002_s29, %s1190_s29   ;;  %s945_s28 = sphi %s1000_s28, %s1189_s28   ;;  %s941_s27 = sphi %s998_s27, %s1188_s27   ;;  %s937_s26 = sphi %s996_s26, %s1187_s26  }
   0x7   : > { %s1019_s8 = sadd.s32 1, %s949_s29   ;;  %s181_s9 = sadd.s32 1, %s945_s28 }
   0x8   : > { %s178_s10 = ssub.s32 %s949_s29, %s1019_s8  ;;  %p191_p0 = scmp.ne.s32.totalorder %s945_s28, %s941_s27 }
   0x9   : > { %p179_p1 = scmp.eq.s32.totalorder %s178_s10, 0  ;;  %p192_p2 = scmp.eq.s32.totalorder %s751_s6, 1 }
   0xa   : > { %p197_p3 = scmp.ne.s32.totalorder %s941_s27, %s937_s26  ;;  %p198_p4 = scmp.eq.s32.totalorder %s752_s30, 1 }
   0xb   : > { %s1031_s11 = scalar_select %p179_p1, %s945_s28, %s181_s9  }
   0xc   : > { %p1033_p5 = por %p192_p2, %p191_p0  ;;  %p1037_p6 = por %p198_p4, %p197_p3 }
   0xd   : > { %p755_p7 = scmp.ge.s32.totalorder %s949_s29, 1  ;;  %p243_p8 = scmp.lt.s32.totalorder %s949_s29, 3 }
   0xf   : > { %p244_p9 = pnand %p755_p7, %p243_p8 }
  0x10   : > { %s1078_s21 = sshll.u32 (!%p244_p9), %s751_s6, 1  ;;  %s272_s25 = sand.u32 (!%p244_p9), 1, %s941_s27  }
  0x11   : > { %247 = sbr.rel (%p244_p9) target bundleno = 654 (0x28e), region = 48  ;;  %p276_p10 = scmp.lt.s32.totalorder (!%p244_p9), %s1078_s21, 3 }
  0x12   : > { %s688_s10 = scalar_lea.hbm (!%p244_p9), %s1184_s7, %s1078_s21  ;;  %s678_s17 = scalar_lea.sflag (!%p244_p9), [#allocation4], %s272_s25 }
  0x13   : > { %s692_s16 = sshll.u32 (!%p244_p9), %s688_s10, 4  ;;  %s693_s16 = int_to_ptr.hbm [resolvable:$true] %s692_s16 }
  0x14   : > { %s901_s18 = sshra.s32 (!%p244_p9), %s693_s16, 4  ;;  %s902_s18 = int_to_ptr.hbm [resolvable:$true] %s901_s18 }
  0x15   : > { %p908_p0 = scmp.lt.s32.totalorder (!%p244_p9), %s902_s18, %s1184_s7 }
  0x16   : > { %v290_v1 = vld [vmem:[%s1178_s1 + $0x18] sm:$0xff]  ;;  %v288_v2 = vld [vmem:[%s1178_s1 + $0x8] sm:$0xff]  ;;  %v951_v4 = vmov 0   ;;  %v285_v5 = vld [vmem:[%s1179_s2 + $0x10] sm:$0xff]  ;;  %v952_v7 = vmov 1   ;;  %s277_s22 = scalar_select %p276_p10, %s1078_s21, 3 }
  0x17   : > { %v286_v3 = vld [vmem:[%s1179_s2 + $0x18] sm:$0xff]  ;;  %833 = vset.pattern.permute.xlu2 %v951_v4  ;;  %831 = vset.pattern.permute.xlu1 %v951_v4  ;;  %v289_v6 = vld [vmem:[%s1178_s1 + $0x10] sm:$0xff]  ;;  %v284_v8 = vld [vmem:[%s1179_s2 + $0x8] sm:$0xff]  ;;  %vm428_vm0 = vcmask 261120   ;;  %vm669_vm1 = vcmask 1040384   ;;  %s903_s21 = scalar_lea.hbm %s902_s18, 2 }
  0x18   : > { %830 = vset.pattern.permute.xlu0 %v951_v4  ;;  %298 = vperm.xlu2 %833, %v288_v2   ;;  %v287_v9 = vld [vmem:[%s1178_s1] sm:$0xff]  ;;  %v406_v11 = vld [vmem:[%s1181_s4 + $0x10] sm:$0xff]  ;;  %v774_v12 = vld [vmem:[%s1181_s4 + $0x38] sm:$0xff]  ;;  %s758_s23 = sshll.u32 %s277_s22, 1  ;;  %p904_p11 = scmp.ne.s32.totalorder %s902_s18, %s903_s21 }
  0x19   : > { %308 = vperm.xlu0 %830, %v290_v1   ;;  %343 = vperm.xlu1 %831, %v286_v3   ;;  %v283_v10 = vld [vmem:[%s1179_s2] sm:$0xff]  ;;  %v772_v13 = vld [vmem:[%s1181_s4 + $0x28] sm:$0xff]  ;;  %s279_s30 = scalar_lea.vmem %s1177_s0, %s758_s23  ;;  %v407_v35 = vld [vmem:[%s1181_s4 + $0x18] sm:$0xff]  ;;  %s907_s22 = scalar_lea.hbm %s1184_s7, 4 }
  0x1a   : > { %v282_v14 = vld [vmem:[%s279_s30] sm:$0xf]  ;;  %v405_v62 = vld [vmem:[%s1181_s4 + $0x8] sm:$0xff]  ;;  %s756_s30 = sshll.u32 %s272_s25, 1  ;;  %p905_p12 = pnand %p904_p11, %p1033_p5 }
  0x1b   : > { %v312_v16 = vperm.slane %v282_v14, 0  ;;  %v313_v17 = vperm.slane %v282_v14, 2  ;;  %v370_v22 = vperm.slane %v282_v14, 1  ;;  %v371_v23 = vperm.slane %v282_v14, 3  ;;  %v404_v47 = vld [vmem:[%s1181_s4] sm:$0xff]  ;;  %s274_s14 = scalar_lea.vmem [#allocation3], %s756_s30  ;;  %p909_p1 = scmp.lt.s32.totalorder %s907_s22, %s903_s21 }
  0x1c   : > { %v400_v14 = vld [vmem:[%s1180_s3] sm:$0xff]  ;;  %s690_s15 = sshll.u32 %s274_s14, 4  ;;  %p906_p13 = pneg %p905_p12  ;;  %s691_s15 = int_to_ptr.vmem [resolvable:$true] %s690_s15 }
  0x1d   : > { %v316_v20 = vperm.slane %v312_v16, 0  ;;  %v317_v21 = vperm.slane %v313_v17, 0  ;;  %v374_v26 = vperm.slane %v370_v22, 1  ;;  %v375_v27 = vperm.slane %v371_v23, 1  ;;  %v616_v17 = vld [vmem:[#allocation2] sm:$0x1]  ;;  %p910_p2 = por %p909_p1, %p908_p0 }
  0x1f   : > { %p911_p3 = pnand %p910_p2, %p906_p13 }
  0x20   : > { %338 = vperm.xlu2 %833, %v285_v5  }
  0x21   : > { %303 = vperm.xlu0 %830, %v289_v6   ;;  %832 = vset.pattern.permute.xlu1 %v952_v7 }
  0x22   : > { %367 = vperm.xlu1 %832, %v290_v1  }
  0x28   : > { %333 = vperm.xlu2 %833, %v284_v8  }
  0x29   : > { %834 = vset.pattern.permute.xlu0 %v952_v7 }
  0x2a   : > { %363 = vperm.xlu0 %834, %v289_v6   ;;  %835 = vset.pattern.permute.xlu1 %v951_v4 }
  0x2b   : > { %293 = vperm.xlu1 %835, %v287_v9  }
  0x30   : > { %328 = vperm.xlu2 %833, %v283_v10   ;;  %v773_v10 = vld [vmem:[%s1181_s4 + $0x30] sm:$0xff] }
  0x32   : > { %355 = vperm.xlu0 %834, %v287_v9  }
  0x33   : > { %836 = vset.pattern.permute.xlu1 %v952_v7 }
  0x34   : > { %359 = vperm.xlu1 %836, %v288_v2  }
  0x38   : > { %420 = vperm.xlu2 %833, %v406_v11   ;;  %v771_v11 = vld [vmem:[%s1181_s4 + $0x20] sm:$0xff] }
  0x3a   : > { %838 = vset.pattern.permute.xlu0 %v951_v4 }
  0x3b   : > { %415 = vperm.xlu0 %838, %v405_v62  }
  0x3c   : > { %837 = vset.pattern.permute.xlu1 %v951_v4 }
  0x3d   : > { %425 = vperm.xlu1 %837, %v407_v35  }
  0x40   : > { %534 = vperm.xlu2 %833, %v774_v12  }
  0x43   : > { %519 = vperm.xlu0 %838, %v771_v11  }
  0x45   : > { %410 = vperm.xlu1 %837, %v404_v47   ;;  %v767_v47 = vld [vmem:[%s1180_s3 + $0x20] sm:$0xff] }
  0x48   : > { %524 = vperm.xlu2 %833, %v772_v13  }
  0x4d   : > { %529 = vperm.xlu1 %837, %v773_v10  }
  0x55   : > { %619 = vperm.xlu1 %837, %v616_v17  }
  0x72   : > { %v299_v15 = vpop.permute.xlu2 %298 }
  0x73   : > { %v320_v52 = vmul.f32 %v316_v20, %v299_v15  ;;  %v321_v53 = vmul.f32 %v317_v21, %v299_v15 }
  0x7a   : > { %v339_v28 = vpop.permute.xlu2 %338 }
  0x82   : > { %v334_v40 = vpop.permute.xlu2 %333 }
  0x83   : > { %v348_v58 = vadd.f32 %v334_v40, %v320_v52  ;;  %v349_v0 = vadd.f32 %v334_v40, %v321_v53  ;;  %v770_v52 = vld [vmem:[%s1180_s3 + $0x38] sm:$0xff] }
  0x8a   : > { %v329_v59 = vpop.permute.xlu2 %328 }
  0x8b   : > { %v309_v18 = vpop.permute.xlu0 %308  ;;  %v344_v19 = vpop.permute.xlu1 %343 }
  0x8c   : > { %v324_v24 = vmul.f32 %v316_v20, %v309_v18  ;;  %v325_v25 = vmul.f32 %v317_v21, %v309_v18  ;;  %v401_v18 = vld [vmem:[%s1180_s3 + $0x8] sm:$0xff] }
  0x8e   : > { %v352_v31 = vadd.f32 %v344_v19, %v324_v24  ;;  %v353_v32 = vadd.f32 %v344_v19, %v325_v25  ;;  %v402_v19 = vld [vmem:[%s1180_s3 + $0x10] sm:$0xff] }
  0x93   : > { %v304_v29 = vpop.permute.xlu0 %303 }
  0x94   : > { %v368_v30 = vpop.permute.xlu1 %367  ;;  %v322_v38 = vmul.f32 %v316_v20, %v304_v29  ;;  %v323_v39 = vmul.f32 %v317_v21, %v304_v29 }
  0x95   : > { %v382_v33 = vmul.f32 %v374_v26, %v368_v30  ;;  %v383_v34 = vmul.f32 %v375_v27, %v368_v30 }
  0x96   : > { %v350_v42 = vadd.f32 %v339_v28, %v322_v38  ;;  %v351_v43 = vadd.f32 %v339_v28, %v323_v39  ;;  %v421_v28 = vpop.permute.xlu2 %420 }
  0x97   : > { %v390_v36 = vadd.f32 %v382_v33, %v352_v31  ;;  %v391_v37 = vadd.f32 %v383_v34, %v353_v32 }
  0x99   : > { %839 = vtanh.f32 %v390_v36 }
  0x9a   : > { %841 = vtanh.f32 %v391_v37 }
  0x9c   : > { %v364_v41 = vpop.permute.xlu0 %363 }
  0x9d   : > { %v380_v44 = vmul.f32 %v374_v26, %v364_v41  ;;  %v381_v45 = vmul.f32 %v375_v27, %v364_v41  ;;  %v294_v46 = vpop.permute.xlu1 %293 }
  0x9e   : > { %v318_v54 = vmul.f32 %v316_v20, %v294_v46  ;;  %v319_v55 = vmul.f32 %v317_v21, %v294_v46  ;;  %v403_v20 = vld [vmem:[%s1180_s3 + $0x18] sm:$0xff] }
  0x9f   : > { %v840_v48 = vpop.eup %839  ;;  %v388_v49 = vadd.f32 %v380_v44, %v350_v42  ;;  %v389_v50 = vadd.f32 %v381_v45, %v351_v43 }
  0xa0   : > { %v842_v51 = vpop.eup %841  ;;  %453 = vmatpush.msra.mxu0 %v840_v48  ;;  %v346_v1 = vadd.f32 %v329_v59, %v318_v54  ;;  %v347_v5 = vadd.f32 %v329_v59, %v319_v55 }
  0xa1   : > { %843 = vtanh.f32 %v388_v49  ;;  %482 = vmatpush.msra.mxu1 %v842_v51  ;;  %v769_v51 = vld [vmem:[%s1180_s3 + $0x30] sm:$0xff] }
  0xa2   : > { %845 = vtanh.f32 %v389_v50  ;;  %v768_v50 = vld [vmem:[%s1180_s3 + $0x28] sm:$0xff] }
  0xa4   : > { %v356_v56 = vpop.permute.xlu0 %355 }
  0xa5   : > { %v376_v57 = vmul.f32 %v374_v26, %v356_v56  ;;  %v377_v60 = vmul.f32 %v375_v27, %v356_v56 }
  0xa6   : > { %v360_v61 = vpop.permute.xlu1 %359 }
  0xa7   : > { %v844_v63 = vpop.eup %843  ;;  %v378_v2 = vmul.f32 %v374_v26, %v360_v61  ;;  %v379_v3 = vmul.f32 %v375_v27, %v360_v61  ;;  %v384_v6 = vadd.f32 %v376_v57, %v346_v1  ;;  %v385_v9 = vadd.f32 %v377_v60, %v347_v5  ;;  %v535_v57 = vpop.permute.xlu2 %534 }
  0xa8   : > { %v846_v4 = vpop.eup %845  ;;  %454 = vmatpush.msra.mxu0 %v844_v63 }
  0xa9   : > { %v386_v7 = vadd.f32 %v378_v2, %v348_v58  ;;  %v387_v8 = vadd.f32 %v379_v3, %v349_v0  ;;  %483 = vmatpush.msra.mxu1 %v846_v4 }
  0xab   : > { %847 = vtanh.f32 %v386_v7 }
  0xac   : > { %849 = vtanh.f32 %v387_v8 }
  0xad   : > { %851 = vtanh.f32 %v384_v6  ;;  %v416_v30 = vpop.permute.xlu0 %415 }
  0xae   : > { %853 = vtanh.f32 %v385_v9 }
  0xaf   : > { %v426_v26 = vpop.permute.xlu1 %425  ;;  %v525_v1 = vpop.permute.xlu2 %524 }
  0xb1   : > { %v848_v12 = vpop.eup %847 }
  0xb2   : > { %v850_v13 = vpop.eup %849  ;;  %455 = vmatpush.msra.mxu0 %v848_v12 }
  0xb3   : > { %v852_v15 = vpop.eup %851  ;;  %484 = vmatpush.msra.mxu1 %v850_v13 }
  0xb4   : > { %v854_v16 = vpop.eup %853  ;;  %456 = vmatpush.msra.mxu0 %v852_v15  ;;  %v615_v15 = vld [vmem:[%s1182_s5] sm:$0x1] }
  0xb5   : > { %485 = vmatpush.msra.mxu1 %v854_v16  ;;  %759 = vmatmul.msk.f32.vlgmr.msra.gmra.mxu0 %vm428_vm0, %v400_v14  ;;  %v520_v5 = vpop.permute.xlu0 %519 }
  0xb6   : > { %763 = vmatmul.msk.f32.vlgmr.msra.gmra.mxu1 %vm428_vm0, %v400_v14 }
  0xb7   : > { %v411_v36 = vpop.permute.xlu1 %410 }
  0xbd   : > { %760 = vmatmul.msk.f32.gmra.mxu0 %vm428_vm0, %v401_v18 }
  0xbe   : > { %764 = vmatmul.msk.f32.gmra.mxu1 %vm428_vm0, %v401_v18 }
  0xbf   : > { %v530_v60 = vpop.permute.xlu1 %529 }
  0xc5   : > { %761 = vmatmul.msk.f32.gmra.mxu0 %vm428_vm0, %v402_v19 }
  0xc6   : > { %765 = vmatmul.msk.f32.gmra.mxu1 %vm428_vm0, %v402_v19 }
  0xc7   : > { %v620_v18 = vpop.permute.xlu1 %619 }
  0xc8   : > { %v622_v19 = vperm.slane %v620_v18, 0 }
  0xcd   : > { %762 = vmatmul.msk.f32.gmra.mxu0 %vm428_vm0, %v403_v20 }
  0xce   : > { %766 = vmatmul.msk.f32.gmra.mxu1 %vm428_vm0, %v403_v20  ;;  %v672_v20 = vlaneseq }
  0xd0   : > { %vm674_vm2 = vcmp.lt.s32.totalorder %v672_v20, 256 }
 0x132   : > { %v458_v21 = vpop.f32.mrf.mxu0 }
 0x133   : > { %v487_v22 = vpop.f32.mrf.mxu1  ;;  %v459_v39 = vadd.f32 %v458_v21, %v411_v36 }
 0x134   : > { %v488_v40 = vadd.f32 %v487_v22, %v411_v36 }
 0x13a   : > { %v461_v23 = vpop.f32.mrf.mxu0 }
 0x13b   : > { %v490_v24 = vpop.f32.mrf.mxu1  ;;  %v462_v37 = vadd.f32 %v461_v23, %v416_v30 }
 0x13c   : > { %v491_v38 = vadd.f32 %v490_v24, %v416_v30 }
 0x142   : > { %v464_v25 = vpop.f32.mrf.mxu0 }
 0x143   : > { %v493_v27 = vpop.f32.mrf.mxu1  ;;  %v465_v31 = vadd.f32 %v464_v25, %v421_v28 }
 0x144   : > { %v494_v34 = vadd.f32 %v493_v27, %v421_v28 }
 0x14a   : > { %v467_v29 = vpop.f32.mrf.mxu0 }
 0x14b   : > { %v468_v32 = vadd.f32 %v467_v29, %v426_v26  ;;  %v496_v33 = vpop.f32.mrf.mxu1 }
 0x14c   : > { %v497_v35 = vadd.f32 %v496_v33, %v426_v26 }
 0x14d   : > { %855 = vtanh.f32 %v468_v32 }
 0x14e   : > { %857 = vtanh.f32 %v497_v35 }
 0x14f   : > { %859 = vtanh.f32 %v465_v31 }
 0x150   : > { %861 = vtanh.f32 %v494_v34 }
 0x151   : > { %863 = vtanh.f32 %v462_v37 }
 0x152   : > { %865 = vtanh.f32 %v491_v38 }
 0x153   : > { %v856_v41 = vpop.eup %855  ;;  %867 = vtanh.f32 %v459_v39 }
 0x154   : > { %v858_v42 = vpop.eup %857  ;;  %869 = vtanh.f32 %v488_v40  ;;  %561 = vmatpush.msra.mxu2 %v856_v41 }
 0x155   : > { %v860_v43 = vpop.eup %859  ;;  %590 = vmatpush.msra.mxu3 %v858_v42 }
 0x156   : > { %v862_v44 = vpop.eup %861  ;;  %562 = vmatpush.msra.mxu2 %v860_v43 }
 0x157   : > { %v864_v45 = vpop.eup %863  ;;  %591 = vmatpush.msra.mxu3 %v862_v44 }
 0x158   : > { %v866_v46 = vpop.eup %865  ;;  %563 = vmatpush.msra.mxu2 %v864_v45 }
 0x159   : > { %v868_v48 = vpop.eup %867  ;;  %592 = vmatpush.msra.mxu3 %v866_v46 }
 0x15a   : > { %v870_v49 = vpop.eup %869  ;;  %564 = vmatpush.msra.mxu2 %v868_v48 }
 0x15b   : > { %593 = vmatpush.msra.mxu3 %v870_v49  ;;  %775 = vmatmul.msk.f32.vlgmr.msra.gmra.mxu2 %vm428_vm0, %v767_v47 }
 0x15c   : > { %779 = vmatmul.msk.f32.vlgmr.msra.gmra.mxu3 %vm428_vm0, %v767_v47 }
 0x163   : > { %776 = vmatmul.msk.f32.gmra.mxu2 %vm428_vm0, %v768_v50 }
 0x164   : > { %780 = vmatmul.msk.f32.gmra.mxu3 %vm428_vm0, %v768_v50 }
 0x16b   : > { %777 = vmatmul.msk.f32.gmra.mxu2 %vm428_vm0, %v769_v51 }
 0x16c   : > { %781 = vmatmul.msk.f32.gmra.mxu3 %vm428_vm0, %v769_v51 }
 0x173   : > { %778 = vmatmul.msk.f32.gmra.mxu2 %vm428_vm0, %v770_v52 }
 0x174   : > { %782 = vmatmul.msk.f32.gmra.mxu3 %vm428_vm0, %v770_v52 }
 0x1de   : > { %v566_v53 = vpop.f32.mrf.mxu2 }
 0x1df   : > { %v595_v54 = vpop.f32.mrf.mxu3  ;;  %v567_v7 = vadd.f32 %v566_v53, %v520_v5 }
 0x1e0   : > { %v596_v8 = vadd.f32 %v595_v54, %v520_v5 }
 0x1e6   : > { %v569_v55 = vpop.f32.mrf.mxu2 }
 0x1e7   : > { %v598_v56 = vpop.f32.mrf.mxu3  ;;  %v570_v4 = vadd.f32 %v569_v55, %v525_v1 }
 0x1e8   : > { %v599_v6 = vadd.f32 %v598_v56, %v525_v1 }
 0x1ee   : > { %v572_v58 = vpop.f32.mrf.mxu2 }
 0x1ef   : > { %v601_v59 = vpop.f32.mrf.mxu3  ;;  %v573_v62 = vadd.f32 %v572_v58, %v530_v60 }
 0x1f0   : > { %v602_v2 = vadd.f32 %v601_v59, %v530_v60 }
 0x1f6   : > { %v575_v61 = vpop.f32.mrf.mxu2 }
 0x1f7   : > { %v576_v63 = vadd.f32 %v575_v61, %v535_v57  ;;  %v604_v0 = vpop.f32.mrf.mxu3 }
 0x1f8   : > { %v605_v3 = vadd.f32 %v604_v0, %v535_v57 }
 0x1f9   : > { %871 = vtanh.f32 %v576_v63 }
 0x1fa   : > { %873 = vtanh.f32 %v605_v3 }
 0x1fb   : > { %875 = vtanh.f32 %v573_v62 }
 0x1fc   : > { %877 = vtanh.f32 %v602_v2 }
 0x1fd   : > { %879 = vtanh.f32 %v570_v4 }
 0x1fe   : > { %881 = vtanh.f32 %v599_v6 }
 0x1ff   : > { %v872_v9 = vpop.eup %871  ;;  %883 = vtanh.f32 %v567_v7 }
 0x200   : > { %v874_v10 = vpop.eup %873  ;;  %885 = vtanh.f32 %v596_v8  ;;  %638 = vmatpush.msrb.mxu0 %v872_v9 }
 0x201   : > { %v876_v11 = vpop.eup %875  ;;  %658 = vmatpush.msrb.mxu1 %v874_v10 }
 0x202   : > { %v878_v12 = vpop.eup %877  ;;  %639 = vmatpush.msrb.mxu0 %v876_v11 }
 0x203   : > { %v880_v13 = vpop.eup %879  ;;  %659 = vmatpush.msrb.mxu1 %v878_v12 }
 0x204   : > { %v882_v14 = vpop.eup %881  ;;  %640 = vmatpush.msrb.mxu0 %v880_v13 }
 0x205   : > { %v884_v16 = vpop.eup %883  ;;  %660 = vmatpush.msrb.mxu1 %v882_v14 }
 0x206   : > { %v886_v17 = vpop.eup %885  ;;  %641 = vmatpush.msrb.mxu0 %v884_v16 }
 0x207   : > { %661 = vmatpush.msrb.mxu1 %v886_v17  ;;  %783 = vmatmul.msk.f32.vlgmr.msrb.gmra.mxu0 %vm428_vm0, %v615_v15 }
 0x208   : > { %784 = vmatmul.msk.f32.vlgmr.msrb.gmra.mxu1 %vm428_vm0, %v615_v15 }
 0x284   : > { %v643_v21 = vpop.f32.mrf.mxu0 }
 0x285   : > { %v663_v22 = vpop.f32.mrf.mxu1  ;;  %v644_v24 = vadd.f32 %v643_v21, %v622_v19 }
 0x286   : > { %v664_v23 = vadd.f32 %v663_v22, %v622_v19 }
 0x288   : > { %v668_v25 = vrot.slane %v664_v23, 7 }
 0x28a   : > { %v670_v26 = vsel %vm669_vm1, %v644_v24, %v668_v25 }
 0x28b   : > { %676 = vst.msk [vmem:[%s274_s14] sm:$0x3] %vm674_vm2, %v670_v26 }
 0x28c   : > { %914 = shalt.err (!%p911_p3)
}
 0x28d   : > { %789 = dma.vmem_to_hbm [thread:$0]  (%p1033_p5), %s691_s15, 32, %s693_s16, %s678_s17  }
 0x28e PF: > { %p795_p4 = scmp.ge.s32.totalorder %s949_s29, 2  ;;  %s704_s25 = sand.u32 1, %s937_s26  }
 0x28f   : > { %s705_s30 = scalar_lea.sflag [#allocation4], %s704_s25 }
 0x290   : > { %p792_p7 = pnand %p795_p4, %p1037_p6 }
 0x292   : > { %p793_p8 = pneg %p792_p7 }
 0x294   : > { %932 = dma.done.wait (%p793_p8), %s705_s30, 32  }
 0x295   : > { %934 = vsyncadd (%p793_p8), %s705_s30, 4294967264  ;;  %p19_p9 = scmp.ge.s32.totalorder %s1019_s8, 4   ;;  %s1187_s26 = smov %s941_s27 }
 0x296   : > { %s1188_s27 = smov %s945_s28  ;;  %s1189_s28 = smov %s1031_s11 }
 0x297   : > { %s1190_s29 = smov %s1019_s8  ;;  %21 = sbr.rel (!%p19_p9) target bundleno = 6 (0x6), region = 85 }
 0x29c   :  { %711 = vsyncpa [#allocation4], 1 }
 0x29d   :  { %713 = vsyncpa [#allocation4 + $0x1], 1 }

</bundles_post_ra>
